<compile_context>
chip_gen: v6e
topology: v6e:2x2x1
jax: 0.10.0
libtpu: 0.0.40
codegen_flags: <defaults>
</compile_context>

<pallas_src>
import math

import jax
import jax.numpy as jnp
from jax import lax
from jax.experimental import pallas as pl
from jax.experimental.pallas import tpu as pltpu

LANE = 128     # vreg lane width
SUBLANE = 8    # f32 sublane count


def _round_up(x, m):
    return (x + m - 1) // m * m


def dqn_kernel(x_ref, w1_ref, b1_ref, w2_ref, b2_ref, w3t_ref, b3t_ref, o_ref):
    mm = w1_ref.dtype  # bf16 (or f32 if use_bf16=False)

    # Layer 1: (TB, in) @ (in, H) -> f32 acc; bias + ReLU in f32 on the VPU.
    x = x_ref[...].astype(mm)
    h1 = jnp.dot(x, w1_ref[...], preferred_element_type=jnp.float32)
    h1 = jnp.maximum(h1 + b1_ref[...], 0.0)

    # Layer 2: (TB, H) @ (H, H) -> f32 acc; bias + ReLU in f32.
    h2 = jnp.dot(h1.astype(mm), w2_ref[...], preferred_element_type=jnp.float32)
    h2 = jnp.maximum(h2 + b2_ref[...], 0.0)

    # Layer 3, transposed: contract w3^T (op, H) with h2 (TB, H) over H
    # -> (op, TB).  Lane-dense (TB-wide) store; only 8 sublanes of padding.
    out_t = lax.dot_general(
        w3t_ref[...], h2.astype(mm),
        dimension_numbers=(((1,), (1,)), ((), ())),
        preferred_element_type=jnp.float32)
    o_ref[...] = (out_t + b3t_ref[...]).astype(o_ref.dtype)


def prepare_params(params, *, use_bf16=True):
    """Pad / cast / transpose weights once, outside the per-call hot path."""
    w1, b1, w2, b2, w3, b3 = params
    mm = jnp.bfloat16 if use_bf16 else jnp.float32
    out_dim = w3.shape[1]
    op = _round_up(out_dim, SUBLANE)       # pad output dim only to 8 sublanes
    w3t = jnp.pad(w3.T, ((0, op - out_dim), (0, 0)))          # (op, hidden)
    b3t = jnp.pad(jnp.reshape(b3, (-1, 1)), ((0, op - out_dim), (0, 0)))  # (op, 1)
    return (w1.astype(mm),
            jnp.reshape(b1, (1, -1)).astype(jnp.float32),
            w2.astype(mm),
            jnp.reshape(b2, (1, -1)).astype(jnp.float32),
            w3t.astype(mm),
            b3t.astype(jnp.float32),
            out_dim)


def dqn_forward(x, prepared, *, block_batch=2048):
    w1, b1, w2, b2, w3t, b3t, out_dim = prepared
    batch, in_dim = x.shape
    hidden = w1.shape[1]
    op = w3t.shape[0]

    # ---- batch tiling (tile size always a multiple of 128 lanes) ----
    block_batch = max(LANE, _round_up(block_batch, LANE))
    tb = min(block_batch, _round_up(batch, LANE))
    # Give both v7x TensorCores work when the batch is large enough for 2 tiles.
    if batch >= 2 * LANE and _round_up(batch, LANE) <= block_batch:
        tb = max(LANE, _round_up(pl.cdiv(batch, 2), LANE))

    grid_n = pl.cdiv(batch, tb)
    bp = grid_n * tb
    x_in = x if bp == batch else jnp.pad(x, ((0, bp - batch), (0, 0)))

    w_itemsize = jnp.dtype(w1.dtype).itemsize
    cost = pl.CostEstimate(
        flops=2 * bp * (in_dim * hidden + hidden * hidden + hidden * op),
        transcendentals=0,
        bytes_accessed=(bp * in_dim * x.dtype.itemsize
                        + (w1.size + w2.size + w3t.size) * w_itemsize
                        + (b1.size + b2.size + b3t.size) * 4
                        + bp * op * 4),
    )

    out_t = pl.pallas_call(
        dqn_kernel,
        out_shape=jax.ShapeDtypeStruct((op, bp), jnp.float32),
        grid=(grid_n,),
        in_specs=[
            pl.BlockSpec((tb, in_dim),     lambda i: (i, 0)),   # x: streamed per tile
            pl.BlockSpec((in_dim, hidden), lambda i: (0, 0)),   # weights/biases:
            pl.BlockSpec((1, hidden),      lambda i: (0, 0)),   #   loaded once,
            pl.BlockSpec((hidden, hidden), lambda i: (0, 0)),   #   VMEM-resident
            pl.BlockSpec((1, hidden),      lambda i: (0, 0)),
            pl.BlockSpec((op, hidden),     lambda i: (0, 0)),
            pl.BlockSpec((op, 1),          lambda i: (0, 0)),
        ],
        out_specs=pl.BlockSpec((op, tb), lambda i: (0, i)),
        compiler_params=pltpu.CompilerParams(
            dimension_semantics=("parallel",)),
        cost_estimate=cost,
    )(x_in, w1, b1, w2, b2, w3t, b3t)

    # Slice the 8-sublane / batch padding off and restore (batch, out_dim) layout.
    return out_t[:out_dim, :batch].T


def xavier_uniform(key, fan_in, fan_out):
    # Matches torch.nn.init.xavier_uniform_ (gain=1): U(-a, a), a = sqrt(6/(fan_in+fan_out))
    a = math.sqrt(6.0 / (fan_in + fan_out))
    return jax.random.uniform(key, (fan_in, fan_out), jnp.float32, -a, a)


def init_dqn_params(key, input_dim=4, hidden_dim=64, output_dim=1):
    k1, k2, k3 = jax.random.split(key, 3)
    w1 = xavier_uniform(k1, input_dim, hidden_dim)
    b1 = jnp.zeros((1, hidden_dim), jnp.float32)
    w2 = xavier_uniform(k2, hidden_dim, hidden_dim)
    b2 = jnp.zeros((1, hidden_dim), jnp.float32)
    w3 = xavier_uniform(k3, hidden_dim, output_dim)
    b3 = jnp.zeros((1, output_dim), jnp.float32)
    return (w1, b1, w2, b2, w3, b3)


def dqn_reference(x, params, *, use_bf16=True):
    """Mirrors the kernel numerics (bf16 matmul operands, f32 accumulation)."""
    w1, b1, w2, b2, w3, b3 = params
    mm = jnp.bfloat16 if use_bf16 else jnp.float32
    dot = lambda a, b: jnp.dot(a.astype(mm), b.astype(mm),
                               preferred_element_type=jnp.float32)
    h1 = jnp.maximum(dot(x, w1) + b1, 0.0)
    h2 = jnp.maximum(dot(h1, w2) + b2, 0.0)
    return dot(h2, w3) + b3


def dqn_reference_f32(x, params):
    w1, b1, w2, b2, w3, b3 = params
    h1 = jnp.maximum(x @ w1 + b1, 0.0)
    h2 = jnp.maximum(h1 @ w2 + b2, 0.0)
    return h2 @ w3 + b3


if __name__ == "__main__":
    key = jax.random.PRNGKey(0)
    pkey, xkey1, xkey2 = jax.random.split(key, 3)

    input_dim, hidden_dim, output_dim = 4, 64, 1
    params = init_dqn_params(pkey, input_dim, hidden_dim, output_dim)
    prepared = prepare_params(params)          # pad/cast weights once, off hot path

    # Small batch (single grid step, batch padded 8 -> 128).
    x_small = jax.random.normal(xkey1, (8, input_dim), jnp.float32)
    out_small = jax.block_until_ready(dqn_forward(x_small, prepared))
    assert out_small.shape == (8, output_dim)
    assert jnp.allclose(out_small, dqn_reference(x_small, params),
                        atol=1e-4, rtol=1e-4)
    assert jnp.allclose(out_small, dqn_reference_f32(x_small, params),
                        atol=5e-2, rtol=5e-2)

    # Ragged batch exercising the multi-tile grid (2 steps) + batch-padding path.
    x_big = jax.random.normal(xkey2, (300, input_dim), jnp.float32)
    out_big = jax.block_until_ready(dqn_forward(x_big, prepared))
    assert out_big.shape == (300, output_dim)
    assert jnp.allclose(out_big, dqn_reference(x_big, params),
                        atol=1e-4, rtol=1e-4)

    print("KERNEL_OK")
</pallas_src>

<mosaic_0001>
module attributes {stable_mosaic.version = 11 : i64} {
  func.func @dqn_kernel(%arg0: i32, %arg1: memref<128x4xf32, #tpu.memory_space<vmem>>, %arg2: memref<4x64xbf16, #tpu.memory_space<vmem>>, %arg3: memref<1x64xf32, #tpu.memory_space<vmem>>, %arg4: memref<64x64xbf16, #tpu.memory_space<vmem>>, %arg5: memref<1x64xf32, #tpu.memory_space<vmem>>, %arg6: memref<8x64xbf16, #tpu.memory_space<vmem>>, %arg7: memref<8x1xf32, #tpu.memory_space<vmem>>, %arg8: memref<8x128xf32, #tpu.memory_space<vmem>>) attributes {dimension_semantics = [#tpu.dimension_semantics<parallel>], iteration_bounds = array<i64: 1>, scalar_prefetch = 0 : i64, scratch_operands = 0 : i64, tpu.core_type = #tpu.core_type<tc>, window_params = [{transform_indices = @transform_0, window_bounds = array<i64: 128, 4>}, {pipeline_mode = #tpu.pipeline_mode<synchronous>, transform_indices = @transform_1, window_bounds = array<i64: 4, 64>}, {pipeline_mode = #tpu.pipeline_mode<synchronous>, transform_indices = @transform_2, window_bounds = array<i64: 1, 64>}, {pipeline_mode = #tpu.pipeline_mode<synchronous>, transform_indices = @transform_3, window_bounds = array<i64: 64, 64>}, {pipeline_mode = #tpu.pipeline_mode<synchronous>, transform_indices = @transform_4, window_bounds = array<i64: 1, 64>}, {pipeline_mode = #tpu.pipeline_mode<synchronous>, transform_indices = @transform_5, window_bounds = array<i64: 8, 64>}, {pipeline_mode = #tpu.pipeline_mode<synchronous>, transform_indices = @transform_6, window_bounds = array<i64: 8, 1>}, {transform_indices = @transform_7, window_bounds = array<i64: 8, 128>}]} {
    %c0 = arith.constant 0 : index
    %c0_0 = arith.constant 0 : index
    %0 = vector.load %arg1[%c0, %c0_0] : memref<128x4xf32, #tpu.memory_space<vmem>>, vector<128x4xf32>
    %1 = arith.truncf %0 : vector<128x4xf32> to vector<128x4xbf16>
    %c0_1 = arith.constant 0 : index
    %c0_2 = arith.constant 0 : index
    %2 = vector.load %arg2[%c0_1, %c0_2] : memref<4x64xbf16, #tpu.memory_space<vmem>>, vector<4x64xbf16>
    %cst = arith.constant dense<0.000000e+00> : vector<128x64xf32>
    %3 = tpu.matmul %1, %2, %cst {dimension_numbers = #tpu.dot_dimension_numbers<[1], [0], [0], [1], [0, 0, 1, 1], [], []>} : vector<128x4xbf16>, vector<4x64xbf16>, vector<128x64xf32> -> vector<128x64xf32>
    %c0_3 = arith.constant 0 : index
    %c0_4 = arith.constant 0 : index
    %4 = vector.load %arg3[%c0_3, %c0_4] : memref<1x64xf32, #tpu.memory_space<vmem>>, vector<1x64xf32>
    %5 = vector.broadcast %4 : vector<1x64xf32> to vector<128x64xf32>
    %6 = arith.addf %3, %5 : vector<128x64xf32>
    %cst_5 = arith.constant 0.000000e+00 : f32
    %7 = vector.broadcast %cst_5 : f32 to vector<128x64xf32>
    %8 = arith.maximumf %6, %7 : vector<128x64xf32>
    %9 = arith.truncf %8 : vector<128x64xf32> to vector<128x64xbf16>
    %c0_6 = arith.constant 0 : index
    %c0_7 = arith.constant 0 : index
    %10 = vector.load %arg4[%c0_6, %c0_7] : memref<64x64xbf16, #tpu.memory_space<vmem>>, vector<64x64xbf16>
    %cst_8 = arith.constant dense<0.000000e+00> : vector<128x64xf32>
    %11 = tpu.matmul %9, %10, %cst_8 {dimension_numbers = #tpu.dot_dimension_numbers<[1], [0], [0], [1], [0, 0, 1, 1], [], []>} : vector<128x64xbf16>, vector<64x64xbf16>, vector<128x64xf32> -> vector<128x64xf32>
    %c0_9 = arith.constant 0 : index
    %c0_10 = arith.constant 0 : index
    %12 = vector.load %arg5[%c0_9, %c0_10] : memref<1x64xf32, #tpu.memory_space<vmem>>, vector<1x64xf32>
    %13 = vector.broadcast %12 : vector<1x64xf32> to vector<128x64xf32>
    %14 = arith.addf %11, %13 : vector<128x64xf32>
    %cst_11 = arith.constant 0.000000e+00 : f32
    %15 = vector.broadcast %cst_11 : f32 to vector<128x64xf32>
    %16 = arith.maximumf %14, %15 : vector<128x64xf32>
    %c0_12 = arith.constant 0 : index
    %c0_13 = arith.constant 0 : index
    %17 = vector.load %arg6[%c0_12, %c0_13] : memref<8x64xbf16, #tpu.memory_space<vmem>>, vector<8x64xbf16>
    %18 = arith.truncf %16 : vector<128x64xf32> to vector<128x64xbf16>
    %cst_14 = arith.constant dense<0.000000e+00> : vector<8x128xf32>
    %19 = tpu.matmul %17, %18, %cst_14 {dimension_numbers = #tpu.dot_dimension_numbers<[1], [1], [0], [0], [0, 0, 1, 0], [], []>} : vector<8x64xbf16>, vector<128x64xbf16>, vector<8x128xf32> -> vector<8x128xf32>
    %c0_15 = arith.constant 0 : index
    %c0_16 = arith.constant 0 : index
    %20 = vector.load %arg7[%c0_15, %c0_16] : memref<8x1xf32, #tpu.memory_space<vmem>>, vector<8x1xf32>
    %21 = vector.broadcast %20 : vector<8x1xf32> to vector<8x128xf32>
    %22 = arith.addf %19, %21 : vector<8x128xf32>
    %c0_17 = arith.constant 0 : index
    %c0_18 = arith.constant 0 : index
    %23 = vector.load %arg8[%c0_17, %c0_18] : memref<8x128xf32, #tpu.memory_space<vmem>>, vector<8x128xf32>
    tpu.vector_store %arg8[%c0_17, %c0_18], %22 {strides = array<i32>} : memref<8x128xf32, #tpu.memory_space<vmem>>, vector<8x128xf32>,
    return
  }
  func.func @transform_0(%arg0: i32) -> (i32, i32) {
    %c0_i32 = arith.constant 0 : i32
    %c0_i32_0 = arith.constant 0 : i32
    return %arg0, %c0_i32 : i32, i32
  }
  func.func @transform_1(%arg0: i32) -> (i32, i32) {
    %c0_i32 = arith.constant 0 : i32
    %c0_i32_0 = arith.constant 0 : i32
    %c0_i32_1 = arith.constant 0 : i32
    return %c0_i32, %c0_i32_0 : i32, i32
  }
  func.func @transform_2(%arg0: i32) -> (i32, i32) {
    %c0_i32 = arith.constant 0 : i32
    %c0_i32_0 = arith.constant 0 : i32
    %c0_i32_1 = arith.constant 0 : i32
    return %c0_i32, %c0_i32_0 : i32, i32
  }
  func.func @transform_3(%arg0: i32) -> (i32, i32) {
    %c0_i32 = arith.constant 0 : i32
    %c0_i32_0 = arith.constant 0 : i32
    %c0_i32_1 = arith.constant 0 : i32
    return %c0_i32, %c0_i32_0 : i32, i32
  }
  func.func @transform_4(%arg0: i32) -> (i32, i32) {
    %c0_i32 = arith.constant 0 : i32
    %c0_i32_0 = arith.constant 0 : i32
    %c0_i32_1 = arith.constant 0 : i32
    return %c0_i32, %c0_i32_0 : i32, i32
  }
  func.func @transform_5(%arg0: i32) -> (i32, i32) {
    %c0_i32 = arith.constant 0 : i32
    %c0_i32_0 = arith.constant 0 : i32
    %c0_i32_1 = arith.constant 0 : i32
    return %c0_i32, %c0_i32_0 : i32, i32
  }
  func.func @transform_6(%arg0: i32) -> (i32, i32) {
    %c0_i32 = arith.constant 0 : i32
    %c0_i32_0 = arith.constant 0 : i32
    %c0_i32_1 = arith.constant 0 : i32
    return %c0_i32, %c0_i32_0 : i32, i32
  }
  func.func @transform_7(%arg0: i32) -> (i32, i32) {
    %c0_i32 = arith.constant 0 : i32
    %c0_i32_0 = arith.constant 0 : i32
    return %c0_i32, %arg0 : i32, i32
  }
}

</mosaic_0001>

<bundles_post_ra>
// kernel: tpu_custom_call.1
= control target key start
LH: loop header
LB: loop body
LE: loop exit
PB: predicated region body
PF: predicated region fallthrough
CT: control target
= control target key end

     0   :  { %vm85_vm0 = vcmask 1041408   ;;  %vm60_vm1 = vcmask 31744   ;;  %s805_s0 = inlined_call_operand.vmem [shape: f32[128,4], index: 0, kind: input, shape index: {}]   ;;  %s806_s1 = inlined_call_operand.vmem [shape: bf16[4,64], index: 1, kind: input, shape index: {}]   ;;  %s807_s2 = inlined_call_operand.vmem [shape: f32[1,64], index: 2, kind: input, shape index: {}]   ;;  %s808_s3 = inlined_call_operand.vmem [shape: bf16[64,64], index: 3, kind: input, shape index: {}]   ;;  %s809_s4 = inlined_call_operand.vmem [shape: f32[1,64], index: 4, kind: input, shape index: {}]   ;;  %s810_s5 = inlined_call_operand.vmem [shape: bf16[8,64], index: 5, kind: input, shape index: {}]   ;;  %s811_s6 = inlined_call_operand.vmem [shape: f32[8,1], index: 6, kind: input, shape index: {}]   ;;  %s812_s7 = inlined_call_operand.hbm [shape: f32[8,128], index: 7, kind: output, shape index: {}]  }
   0x1   :  { %v52_v0 = vld [vmem:[%s806_s1] sm:$0x3]  ;;  %v29_v2 = vld [vmem:[%s805_s0 + $0x8] sm:$0xff]  ;;  %v30_v5 = vld [vmem:[%s805_s0 + $0x10] sm:$0xff] }
   0x2   :  { %v28_v1 = vld [vmem:[%s805_s0] sm:$0xff]  ;;  %599 = vmatprep.subr.msk.bf16.mxu1 %vm85_vm0, %v52_v0  ;;  %v87_v3 = vsel %vm85_vm0, %v52_v0, 0  ;;  %v31_v6 = vld [vmem:[%s805_s0 + $0x18] sm:$0xff]  ;;  %v33_v9 = vld [vmem:[%s805_s0 + $0x28] sm:$0xff] }
   0x3   :  { %v44_v4 = vpack.c.bf16 %v29_v2, %v28_v1  ;;  %v32_v7 = vld [vmem:[%s805_s0 + $0x20] sm:$0xff]  ;;  %538 = vmatpush3.bf16.msra.mxu1 %v87_v3  ;;  %v45_v8 = vpack.c.bf16 %v31_v6, %v30_v5  ;;  %v34_v11 = vld [vmem:[%s805_s0 + $0x30] sm:$0xff]  ;;  %v35_v12 = vld [vmem:[%s805_s0 + $0x38] sm:$0xff] }
   0x4   :  { %v46_v10 = vpack.c.bf16 %v33_v9, %v32_v7  ;;  %v36_v13 = vld [vmem:[%s805_s0 + $0x40] sm:$0xff]  ;;  %v37_v14 = vld [vmem:[%s805_s0 + $0x48] sm:$0xff]  ;;  %v605_v15 = vld [vmem:[%s808_s3 + $0x18] sm:$0xff]   ;;  %v47_v17 = vpack.c.bf16 %v35_v12, %v34_v11 }
   0x5   :  { %539 = vmatprep.mubr.msk.bf16.mxu1 %vm60_vm1, %v44_v4  ;;  %v606_v16 = vld [vmem:[%s808_s3 + $0x10] sm:$0xff]   ;;  %555 = vmatprep.subr.bf16.mxu1 %v605_v15 }
   0x6   :  { %540 = vmatmul.mubr.msk.bf16.vlgmr.msra.gmra.mxu1 %vm60_vm1, %v45_v8 }
   0x7   :  { %543 = vmatprep.mubr.msk.bf16.mxu1 %vm60_vm1, %v46_v10  ;;  %556 = vmatpush3.bf16.msra.mxu1 %v605_v15 }
   0x8   :  { %12 = vsyncpa [#allocation3], 0  ;;  %v48_v18 = vpack.c.bf16 %v37_v14, %v36_v13  ;;  %557 = vmatprep.subr.bf16.mxu1 %v606_v16  ;;  %v607_v19 = vld [vmem:[%s808_s3 + $0x8] sm:$0xff]   ;;  %v38_v20 = vld [vmem:[%s805_s0 + $0x50] sm:$0xff]  ;;  %vm249_vm2 = vcmask 523264   ;;  %vm632_vm3 = vmmov 0  }
   0x9   :  { %v39_v21 = vld [vmem:[%s805_s0 + $0x58] sm:$0xff]  ;;  %v40_v22 = vld [vmem:[%s805_s0 + $0x60] sm:$0xff]  ;;  %v41_v23 = vld [vmem:[%s805_s0 + $0x68] sm:$0xff]  ;;  %s634_s21 = smov [#allocation2]  }
   0xa   :  { %v49_v24 = vpack.c.bf16 %v39_v21, %v38_v20  ;;  %v50_v25 = vpack.c.bf16 %v41_v23, %v40_v22  ;;  %v42_v26 = vld [vmem:[%s805_s0 + $0x70] sm:$0xff]  ;;  %v43_v27 = vld [vmem:[%s805_s0 + $0x78] sm:$0xff]  ;;  %v608_v29 = vld [vmem:[%s808_s3] sm:$0xff]   ;;  %v631_v23 = vmov 0.0   ;;  %s476_s22 = sshll.u32 %s634_s21, 4  ;;  %s477_s22 = int_to_ptr.vmem [resolvable:$true] %s476_s22 }
   0xb   :  { %558 = vmatpush3.bf16.msra.mxu1 %v606_v16  ;;  %v51_v28 = vpack.c.bf16 %v43_v27, %v42_v26  ;;  %v484_v32 = vld [vmem:[%s807_s2] ss:$0 sm:$0xff]  ;;  %579 = vmatprep.subr.bf16.mxu0 %v631_v23  ;;  %s609_s23 = scalar_lea.vmem %s477_s22, 128  ;;  %p614_p1 = scmp.lt.s32.totalorder %s477_s22, %s477_s22 }
   0xc   :  { %559 = vmatprep.subr.bf16.mxu1 %v607_v19  ;;  %595 = vmatprep.mubr.msk.bf16.mxu0 %vm632_vm3, %v631_v23  ;;  %v765_v27 = vld [vmem:[%s809_s4] ss:$0 sm:$0xff]  ;;  %p610_p0 = scmp.ne.s32.totalorder %s477_s22, %s609_s23  ;;  %p615_p2 = scmp.lt.s32.totalorder %s609_s23, %s609_s23 }
   0xe   :  { %544 = vmatmul.mubr.msk.bf16.gmra.mxu1 %vm60_vm1, %v47_v17  ;;  %p616_p3 = por %p615_p2, %p614_p1 }
   0xf   :  { %547 = vmatprep.mubr.msk.bf16.mxu1 %vm60_vm1, %v48_v18  ;;  %560 = vmatpush3.bf16.msra.mxu1 %v607_v19 }
  0x10   :  { %561 = vmatprep.subr.bf16.mxu1 %v608_v29  ;;  %p617_p4 = pnand %p616_p3, %p610_p0 }
  0x13   :  { %562 = vmatpush3.bf16.msra.mxu1 %v608_v29 }
  0x16   :  { %548 = vmatmul.mubr.msk.bf16.gmra.mxu1 %vm60_vm1, %v49_v24  ;;  %v396_v24 = vld [vmem:[%s811_s6] sm:$0xff] }
  0x17   :  { %551 = vmatprep.mubr.msk.bf16.mxu1 %vm60_vm1, %v50_v25  ;;  %v633_v25 = vmov 0  }
  0x18   :  { %604 = vset.pattern.permute.xlu0 %v633_v25 }
  0x19   :  { %399 = vperm.xlu0 %604, %v396_v24  }
  0x1e   :  { %552 = vmatmul.mubr.msk.bf16.gmra.mxu1 %vm60_vm1, %v51_v28 }
  0xc6   :  { %v541_v30 = vpop.f32.mrf.mxu1 }
  0xc7   :  { %v132_v36 = vadd.f32 %v541_v30, %v484_v32 }
  0xc8   :  { %v123_v31 = vpop.f32.mrf.mxu1 }
  0xc9   :  { %v124_v34 = vadd.f32 %v484_v32, %v123_v31  ;;  %v188_v43 = vmax.f32 %v132_v36, 0.0 }
  0xca   :  { %v542_v33 = vpop.f32.mrf.mxu1 }
  0xcb   :  { %v135_v35 = vadd.f32 %v542_v33, %v484_v32  ;;  %v186_v41 = vmax.f32 %v124_v34, 0.0 }
  0xcc   :  { %v126_v37 = vpop.f32.mrf.mxu1 }
  0xcd   :  { %v127_v38 = vadd.f32 %v484_v32, %v126_v37  ;;  %v189_v39 = vmax.f32 %v135_v35, 0.0 }
  0xce   :  { %v545_v40 = vpop.f32.mrf.mxu1 }
  0xcf   :  { %v187_v42 = vmax.f32 %v127_v38, 0.0  ;;  %v203_v46 = vpack.c.bf16 %v189_v39, %v188_v43  ;;  %v148_v50 = vadd.f32 %v545_v40, %v484_v32 }
  0xd0   :  { %v139_v44 = vpop.f32.mrf.mxu1 }
  0xd1   :  { %v202_v45 = vpack.c.bf16 %v187_v42, %v186_v41  ;;  %v140_v48 = vadd.f32 %v484_v32, %v139_v44  ;;  %v192_v57 = vmax.f32 %v148_v50, 0.0 }
  0xd2   :  { %v546_v47 = vpop.f32.mrf.mxu1 }
  0xd3   :  { %v151_v49 = vadd.f32 %v546_v47, %v484_v32  ;;  %563 = vmatprep.mubr.msk.bf16.mxu1 %vm249_vm2, %v202_v45  ;;  %v190_v55 = vmax.f32 %v140_v48, 0.0 }
  0xd4   :  { %v142_v51 = vpop.f32.mrf.mxu1  ;;  %564 = vmatmul.mubr.msk.bf16.vlgmr.msra.gmra.mxu1 %vm249_vm2, %v203_v46 }
  0xd5   :  { %v143_v52 = vadd.f32 %v484_v32, %v142_v51  ;;  %v193_v53 = vmax.f32 %v151_v49, 0.0 }
  0xd6   :  { %v549_v54 = vpop.f32.mrf.mxu1 }
  0xd7   :  { %v191_v56 = vmax.f32 %v143_v52, 0.0  ;;  %v205_v60 = vpack.c.bf16 %v193_v53, %v192_v57  ;;  %v164_v0 = vadd.f32 %v549_v54, %v484_v32 }
  0xd8   :  { %v155_v58 = vpop.f32.mrf.mxu1 }
  0xd9   :  { %v204_v59 = vpack.c.bf16 %v191_v56, %v190_v55  ;;  %v156_v62 = vadd.f32 %v484_v32, %v155_v58  ;;  %v196_v7 = vmax.f32 %v164_v0, 0.0 }
  0xda   :  { %v550_v61 = vpop.f32.mrf.mxu1 }
  0xdb   :  { %v167_v63 = vadd.f32 %v550_v61, %v484_v32  ;;  %567 = vmatprep.mubr.msk.bf16.mxu1 %vm249_vm2, %v204_v59  ;;  %v194_v5 = vmax.f32 %v156_v62, 0.0 }
  0xdc   :  { %v158_v1 = vpop.f32.mrf.mxu1  ;;  %568 = vmatmul.mubr.msk.bf16.gmra.mxu1 %vm249_vm2, %v205_v60 }
  0xdd   :  { %v159_v2 = vadd.f32 %v484_v32, %v158_v1  ;;  %v197_v3 = vmax.f32 %v167_v63, 0.0 }
  0xde   :  { %v553_v4 = vpop.f32.mrf.mxu1 }
  0xdf   :  { %v195_v6 = vmax.f32 %v159_v2, 0.0  ;;  %v207_v10 = vpack.c.bf16 %v197_v3, %v196_v7  ;;  %v180_v14 = vadd.f32 %v553_v4, %v484_v32 }
  0xe0   :  { %v171_v8 = vpop.f32.mrf.mxu1 }
  0xe1   :  { %v206_v9 = vpack.c.bf16 %v195_v6, %v194_v5  ;;  %v172_v12 = vadd.f32 %v484_v32, %v171_v8  ;;  %v200_v20 = vmax.f32 %v180_v14, 0.0 }
  0xe2   :  { %v554_v11 = vpop.f32.mrf.mxu1 }
  0xe3   :  { %v183_v13 = vadd.f32 %v554_v11, %v484_v32  ;;  %571 = vmatprep.mubr.msk.bf16.mxu1 %vm249_vm2, %v206_v9  ;;  %v198_v18 = vmax.f32 %v172_v12, 0.0 }
  0xe4   :  { %v174_v15 = vpop.f32.mrf.mxu1  ;;  %572 = vmatmul.mubr.msk.bf16.gmra.mxu1 %vm249_vm2, %v207_v10 }
  0xe5   :  { %v175_v16 = vadd.f32 %v484_v32, %v174_v15  ;;  %v201_v17 = vmax.f32 %v183_v13, 0.0 }
  0xe7   :  { %v199_v19 = vmax.f32 %v175_v16, 0.0  ;;  %v209_v22 = vpack.c.bf16 %v201_v17, %v200_v20 }
  0xe9   :  { %v208_v21 = vpack.c.bf16 %v199_v19, %v198_v18 }
  0xeb   :  { %575 = vmatprep.mubr.msk.bf16.mxu1 %vm249_vm2, %v208_v21 }
  0xec   :  { %576 = vmatmul.mubr.msk.bf16.gmra.mxu1 %vm249_vm2, %v209_v22 }
 0x194   :  { %v565_v26 = vpop.f32.mrf.mxu1 }
 0x195   :  { %v317_v29 = vadd.f32 %v565_v26, %v765_v27 }
 0x196   :  { %v308_v28 = vpop.f32.mrf.mxu1 }
 0x197   :  { %v309_v31 = vadd.f32 %v765_v27, %v308_v28  ;;  %v373_v34 = vmax.f32 %v317_v29, 0.0  ;;  %v387_v28 = vld [vmem:[%s810_s5] sm:$0xf]  ;;  %v400_v29 = vpop.permute.xlu0 %399 }
 0x198   :  { %v566_v30 = vpop.f32.mrf.mxu1 }
 0x199   :  { %v320_v32 = vadd.f32 %v566_v30, %v765_v27  ;;  %v371_v38 = vmax.f32 %v309_v31, 0.0 }
 0x19a   :  { %v311_v33 = vpop.f32.mrf.mxu1 }
 0x19b   :  { %v374_v35 = vmax.f32 %v320_v32, 0.0  ;;  %v312_v36 = vadd.f32 %v765_v27, %v311_v33 }
 0x19c   :  { %v569_v37 = vpop.f32.mrf.mxu1 }
 0x19d   :  { %v389_v39 = vpack.c.bf16 %v374_v35, %v373_v34  ;;  %v372_v40 = vmax.f32 %v312_v36, 0.0  ;;  %v333_v13 = vadd.f32 %v569_v37, %v765_v27 }
 0x19e   :  { %v324_v41 = vpop.f32.mrf.mxu1 }
 0x19f   :  { %v388_v42 = vpack.c.bf16 %v372_v40, %v371_v38  ;;  %v377_v16 = vmax.f32 %v333_v13, 0.0  ;;  %v325_v19 = vadd.f32 %v765_v27, %v324_v41  ;;  %v409_v26 = vsel %vm249_vm2, %v389_v39, 0 }
 0x1a0   :  { %v570_v43 = vpop.f32.mrf.mxu1 }
 0x1a1   :  { %v336_v11 = vadd.f32 %v570_v43, %v765_v27  ;;  %v375_v22 = vmax.f32 %v325_v19, 0.0 }
 0x1a2   :  { %v327_v44 = vpop.f32.mrf.mxu1 }
 0x1a3   :  { %v378_v14 = vmax.f32 %v336_v11, 0.0  ;;  %v328_v18 = vadd.f32 %v765_v27, %v327_v44 }
 0x1a4   :  { %v573_v45 = vpop.f32.mrf.mxu1 }
 0x1a5   :  { %v349_v1 = vadd.f32 %v573_v45, %v765_v27  ;;  %v391_v17 = vpack.c.bf16 %v378_v14, %v377_v16  ;;  %v376_v20 = vmax.f32 %v328_v18, 0.0 }
 0x1a6   :  { %v340_v46 = vpop.f32.mrf.mxu1 }
 0x1a7   :  { %v381_v4 = vmax.f32 %v349_v1, 0.0  ;;  %v341_v7 = vadd.f32 %v765_v27, %v340_v46  ;;  %v415_v21 = vsel %vm249_vm2, %v391_v17, 0  ;;  %v390_v24 = vpack.c.bf16 %v376_v20, %v375_v22 }
 0x1a8   :  { %v574_v47 = vpop.f32.mrf.mxu1 }
 0x1a9   :  { %v352_v63 = vadd.f32 %v574_v47, %v765_v27  ;;  %v379_v10 = vmax.f32 %v341_v7, 0.0  ;;  %v412_v25 = vsel %vm249_vm2, %v390_v24, 0 }
 0x1aa   :  { %v343_v48 = vpop.f32.mrf.mxu1 }
 0x1ab   :  { %v382_v2 = vmax.f32 %v352_v63, 0.0  ;;  %v344_v6 = vadd.f32 %v765_v27, %v343_v48 }
 0x1ac   :  { %v577_v49 = vpop.f32.mrf.mxu1 }
 0x1ad   :  { %v365_v51 = vadd.f32 %v577_v49, %v765_v27  ;;  %v393_v5 = vpack.c.bf16 %v382_v2, %v381_v4  ;;  %v380_v8 = vmax.f32 %v344_v6, 0.0 }
 0x1ae   :  { %v356_v50 = vpop.f32.mrf.mxu1 }
 0x1af   :  { %v385_v55 = vmax.f32 %v365_v51, 0.0  ;;  %v357_v58 = vadd.f32 %v765_v27, %v356_v50  ;;  %v421_v9 = vsel %vm249_vm2, %v393_v5, 0  ;;  %v392_v12 = vpack.c.bf16 %v380_v8, %v379_v10 }
 0x1b0   :  { %v578_v52 = vpop.f32.mrf.mxu1 }
 0x1b1   :  { %v368_v53 = vadd.f32 %v578_v52, %v765_v27  ;;  %v383_v62 = vmax.f32 %v357_v58, 0.0  ;;  %v418_v15 = vsel %vm249_vm2, %v392_v12, 0 }
 0x1b2   :  { %v359_v54 = vpop.f32.mrf.mxu1 }
 0x1b3   :  { %v386_v56 = vmax.f32 %v368_v53, 0.0  ;;  %v360_v57 = vadd.f32 %v765_v27, %v359_v54  ;;  %v406_v27 = vsel %vm249_vm2, %v388_v42, 0 }
 0x1b5   :  { %v395_v59 = vpack.c.bf16 %v386_v56, %v385_v55  ;;  %v384_v60 = vmax.f32 %v360_v57, 0.0 }
 0x1b7   :  { %v427_v61 = vsel %vm249_vm2, %v395_v59, 0  ;;  %v394_v0 = vpack.c.bf16 %v384_v60, %v383_v62 }
 0x1b8   :  { %580 = vmatpush3.bf16.xpose.msra.mxu0 %v427_v61 }
 0x1b9   :  { %581 = vmatprep.subr.bf16.mxu0 %v631_v23  ;;  %v424_v3 = vsel %vm249_vm2, %v394_v0, 0 }
 0x1c0   :  { %582 = vmatpush3.bf16.xpose.msra.mxu0 %v424_v3 }
 0x1c1   :  { %583 = vmatprep.subr.bf16.mxu0 %v631_v23 }
 0x1c8   :  { %584 = vmatpush3.bf16.xpose.msra.mxu0 %v421_v9 }
 0x1c9   :  { %585 = vmatprep.subr.bf16.mxu0 %v631_v23 }
 0x1d0   :  { %586 = vmatpush3.bf16.xpose.msra.mxu0 %v418_v15 }
 0x1d1   :  { %587 = vmatprep.subr.bf16.mxu0 %v631_v23 }
 0x1d8   :  { %588 = vmatpush3.bf16.xpose.msra.mxu0 %v415_v21 }
 0x1d9   :  { %589 = vmatprep.subr.bf16.mxu0 %v631_v23 }
 0x1e0   :  { %590 = vmatpush3.bf16.xpose.msra.mxu0 %v412_v25 }
 0x1e1   :  { %591 = vmatprep.subr.bf16.mxu0 %v631_v23 }
 0x1e8   :  { %592 = vmatpush3.bf16.xpose.msra.mxu0 %v409_v26 }
 0x1e9   :  { %593 = vmatprep.subr.bf16.mxu0 %v631_v23 }
 0x1f0   :  { %594 = vmatpush3.bf16.xpose.msra.mxu0 %v406_v27 }
 0x1f7   :  { %596 = vmatmul.mubr.msk.bf16.vlgmr.msra.gmra.mxu0 %vm249_vm2, %v387_v28 }
 0x2b7   :  { %v463_v30 = vpop.f32.mrf.mxu0 }
 0x2b8   :  { %v464_v31 = vadd.f32 %v463_v30, %v400_v29 }
 0x2b9   :  { %v597_v32 = vpop.f32.mrf.mxu0 }
 0x2ba   :  { %469 = vst [vmem:[#allocation2] sm:$0xff] %v464_v31 }
 0x2bb   :  { %v466_v33 = vpop.f32.mrf.mxu0 }
 0x2bc   :  { %620 = shalt.err (!%p617_p4)
}
 0x2bd   :  { %479 = dma.vmem_to_hbm [thread:$0]  %s477_s22, 128, %s812_s7, [#allocation3]   ;;  %v598_v23 = vpop.f32.mrf.mxu0 }
 0x2be   :  { %629 = dma.done.wait [#allocation3], 128  }
 0x2bf   :  { %630 = vsyncadd [#allocation3], 4294967168 }
 0x2c0   :  { %483 = vsyncpa [#allocation3], 1 }

</bundles_post_ra>
